<compile_context>
chip_gen: v7x
topology: tpu7x:2x2x1
jax: 0.10.0
libtpu: 0.0.40
codegen_flags: <defaults>
</compile_context>

<pallas_src>
import math
from functools import partial

import jax
import jax.numpy as jnp
from jax.experimental import pallas as pl
from jax.experimental.pallas import tpu as pltpu


# ---------------------------------------------------------------------------
# Fused kernel: implicit im2col -> conv matmul (+bias) -> channels_first LN
# -> transposed (NCHW) store.
# ---------------------------------------------------------------------------
def _patch_embed_kernel(xs_ref, w_ref, b_ref, g_ref, bt_ref, o_ref, *,
                        block_rows, wo, eps):
    # xs_ref: (1, Hs, Ws, K)     space-to-depth'd padded input (one image)
    # w_ref : (DH, DW, K, Cout)  re-flattened conv weights
    # o_ref : (1, Cout, block_rows*wo)  NCHW output tile (lane axis = tokens)
    i = pl.program_id(1)
    r0 = i * block_rows                       # first output row of this tile
    dh, dw, kd, cout = w_ref.shape
    tm = block_rows * wo

    acc = jnp.zeros((tm, cout), jnp.float32)
    for di in range(dh):                      # 2x2 static loop (stride-1 conv)
        for dj in range(dw):
            blk = xs_ref[0, pl.ds(r0 + di, block_rows), pl.ds(dj, wo), :]
            acc = acc + jnp.dot(blk.reshape(tm, kd), w_ref[di, dj],
                                preferred_element_type=jnp.float32)

    y = acc + b_ref[...]                      # conv bias, f32 epilogue
    # channels_first LayerNorm: per token (row), normalize over Cout (lanes).
    mu = jnp.mean(y, axis=-1, keepdims=True)
    var = jnp.mean(jnp.square(y - mu), axis=-1, keepdims=True)
    yn = (y - mu) * jax.lax.rsqrt(var + eps)
    yn = yn * g_ref[...] + bt_ref[...]
    # Transpose on the XLU -> lane-dense NCHW store (lane axis = tokens).
    o_ref[0, :, :] = jnp.transpose(yn).astype(o_ref.dtype)


def _pick_block_rows(Ho, Wo, B):
    """Largest divisor of Ho giving <=2048 tokens/tile, lane-dense output and
    >=2 grid steps per TensorCore, relaxing constraints if needed."""
    divs = [d for d in range(1, Ho + 1) if Ho % d == 0]
    big = lambda d: d * Wo <= 2048
    lane = lambda d: (d * Wo) % 128 == 0
    steps = lambda d: B * (Ho // d) >= 4
    for preds in ([big, lane, steps], [big, steps], [big], []):
        cand = [d for d in divs if all(p(d) for p in preds)]
        if cand:
            return max(cand)
    return Ho


def overlap_patch_embed(x, conv_w, conv_b, ln_w, ln_b, *, stride=4, eps=1e-6,
                        block_rows=None, operand_dtype=None, out_dtype=None):
    """Forward of OverlapPatchEmbed. x: (B, Cin, H, W) NCHW.

    conv_w: (Cout, Cin, kh, kw) (PyTorch OIHW); conv_b/ln_w/ln_b: (Cout,).
    Returns (y_nchw, Ho, Wo).
    """
    B, Cin, H, W = x.shape
    Cout, Cin2, kh, kw = conv_w.shape
    assert Cin == Cin2
    ph, pw = kh // 2, kw // 2
    Ho = (H + 2 * ph - kh) // stride + 1
    Wo = (W + 2 * pw - kw) // stride + 1
    DH = (kh - 1) // stride + 1               # = ceil(kh / stride)
    DW = (kw - 1) // stride + 1
    Hs = Ho + DH - 1                          # space-to-depth spatial extents
    Ws = Wo + DW - 1
    K = stride * stride * Cin                 # per-shift reduce dim (48)

    # --- space-to-depth of the small input (one cheap XLA pass, ~input-sized).
    pad_b = stride * Hs - H - ph
    pad_r = stride * Ws - W - pw
    assert pad_b >= 0 and pad_r >= 0
    xs = jnp.transpose(x, (0, 2, 3, 1))                           # NHWC
    xs = jnp.pad(xs, ((0, 0), (ph, pad_b), (pw, pad_r), (0, 0)))
    xs = (xs.reshape(B, Hs, stride, Ws, stride, Cin)
            .transpose(0, 1, 3, 2, 4, 5)
            .reshape(B, Hs, Ws, K))

    # --- weights -> (DH, DW, K, Cout), same (p, q, ch) flattening as xs.
    w_hwio = jnp.transpose(conv_w, (2, 3, 1, 0))                  # (kh,kw,Cin,Cout)
    w_pad = jnp.pad(w_hwio, ((0, DH * stride - kh), (0, DW * stride - kw),
                             (0, 0), (0, 0)))
    wq = (w_pad.reshape(DH, stride, DW, stride, Cin, Cout)
               .transpose(0, 2, 1, 3, 4, 5)
               .reshape(DH, DW, K, Cout))

    if operand_dtype is not None:             # bf16 operands in HBM (optional)
        xs = xs.astype(operand_dtype)
        wq = wq.astype(operand_dtype)

    if block_rows is None:
        block_rows = _pick_block_rows(Ho, Wo, B)
    assert Ho % block_rows == 0
    n_rt = Ho // block_rows
    tm = block_rows * Wo
    out_dt = out_dtype if out_dtype is not None else x.dtype

    b2 = conv_b.reshape(1, Cout).astype(jnp.float32)
    g2 = ln_w.reshape(1, Cout).astype(jnp.float32)
    bt2 = ln_b.reshape(1, Cout).astype(jnp.float32)

    out = pl.pallas_call(
        partial(_patch_embed_kernel, block_rows=block_rows, wo=Wo, eps=eps),
        out_shape=jax.ShapeDtypeStruct((B, Cout, Ho * Wo), out_dt),
        grid=(B, n_rt),
        in_specs=[
            # per-image slab, resident across the inner (token-tile) grid axis
            pl.BlockSpec((1, Hs, Ws, K), lambda b, i: (b, 0, 0, 0)),
            pl.BlockSpec((DH, DW, K, Cout), lambda b, i: (0, 0, 0, 0)),
            pl.BlockSpec((1, Cout), lambda b, i: (0, 0)),   # conv bias
            pl.BlockSpec((1, Cout), lambda b, i: (0, 0)),   # LN gamma
            pl.BlockSpec((1, Cout), lambda b, i: (0, 0)),   # LN beta
        ],
        out_specs=pl.BlockSpec((1, Cout, tm), lambda b, i: (b, 0, i)),
        compiler_params=pltpu.CompilerParams(
            dimension_semantics=("parallel", "parallel"),
            vmem_limit_bytes=32 * 1024 * 1024,
        ),
    )(xs, wq, b2, g2, bt2)

    y = out.reshape(B, Cout, Ho, Wo)          # free reshape; no transpose pass
    return y, Ho, Wo


# ---------------------------------------------------------------------------
if __name__ == "__main__":
    key = jax.random.PRNGKey(0)
    k_x, k_w, k_b, k_g, k_bt = jax.random.split(key, 5)

    # Small shapes: B=2, in_chans=3, 64x64 image, embed_dim=128 (lane-dense).
    B, Cin, H, W = 2, 3, 64, 64
    embed_dim, patch, stride = 128, 7, 4

    x = jax.random.normal(k_x, (B, Cin, H, W), jnp.float32)
    fan_out = patch * patch * embed_dim
    conv_w = (jax.random.normal(k_w, (embed_dim, Cin, patch, patch), jnp.float32)
              * math.sqrt(2.0 / fan_out))
    conv_b = 0.1 * jax.random.normal(k_b, (embed_dim,), jnp.float32)
    ln_w = 1.0 + 0.1 * jax.random.normal(k_g, (embed_dim,), jnp.float32)
    ln_b = 0.1 * jax.random.normal(k_bt, (embed_dim,), jnp.float32)

    # Plain-JAX reference (conv + channels_first LayerNorm).
    ref = jax.lax.conv_general_dilated(
        x, conv_w, window_strides=(stride, stride),
        padding=((patch // 2, patch // 2), (patch // 2, patch // 2)),
        dimension_numbers=("NCHW", "OIHW", "NCHW"),
        precision=jax.lax.Precision.HIGHEST,
    ) + conv_b[None, :, None, None]
    mu = ref.mean(axis=1, keepdims=True)
    var = ((ref - mu) ** 2).mean(axis=1, keepdims=True)
    ref = (ref - mu) / jnp.sqrt(var + 1e-6)
    ref = ln_w[None, :, None, None] * ref + ln_b[None, :, None, None]

    # f32 operands: strict check.
    fwd = jax.jit(partial(overlap_patch_embed, stride=stride))
    y, Ho, Wo = fwd(x, conv_w, conv_b, ln_w, ln_b)
    y = jax.block_until_ready(y)
    assert y.shape == (B, embed_dim, 16, 16), y.shape
    err = float(jnp.max(jnp.abs(y - ref)))
    assert jnp.allclose(y, ref, rtol=2e-3, atol=2e-3), err

    # bf16 operands in HBM (native MXU path, f32 accumulation): loose check.
    fwd_bf16 = jax.jit(partial(overlap_patch_embed, stride=stride,
                               operand_dtype=jnp.bfloat16))
    y16, _, _ = fwd_bf16(x, conv_w, conv_b, ln_w, ln_b)
    y16 = jax.block_until_ready(y16)
    err16 = float(jnp.max(jnp.abs(y16 - ref)))
    assert jnp.allclose(y16, ref, rtol=3e-2, atol=3e-2), err16

    print("KERNEL_OK")
</pallas_src>

<mosaic_0001>
module attributes {stable_mosaic.version = 11 : i64} {
  func.func @_patch_embed_kernel(%arg0: i32, %arg1: i32, %arg2: memref<1x17x17x48xf32, #tpu.memory_space<vmem>>, %arg3: memref<2x2x48x128xf32, #tpu.memory_space<vmem>>, %arg4: memref<1x128xf32, #tpu.memory_space<vmem>>, %arg5: memref<1x128xf32, #tpu.memory_space<vmem>>, %arg6: memref<1x128xf32, #tpu.memory_space<vmem>>, %arg7: memref<1x128x128xf32, #tpu.memory_space<vmem>>) attributes {dimension_semantics = [#tpu.dimension_semantics<parallel>, #tpu.dimension_semantics<parallel>], iteration_bounds = array<i64: 2, 2>, scalar_prefetch = 0 : i64, scratch_operands = 0 : i64, tpu.core_type = #tpu.core_type<tc>, window_params = [{transform_indices = @transform_0, window_bounds = array<i64: 1, 17, 17, 48>}, {pipeline_mode = #tpu.pipeline_mode<synchronous>, transform_indices = @transform_1, window_bounds = array<i64: 2, 2, 48, 128>}, {pipeline_mode = #tpu.pipeline_mode<synchronous>, transform_indices = @transform_2, window_bounds = array<i64: 1, 128>}, {pipeline_mode = #tpu.pipeline_mode<synchronous>, transform_indices = @transform_3, window_bounds = array<i64: 1, 128>}, {pipeline_mode = #tpu.pipeline_mode<synchronous>, transform_indices = @transform_4, window_bounds = array<i64: 1, 128>}, {transform_indices = @transform_5, window_bounds = array<i64: 1, 128, 128>}]} {
    %c8_i32 = arith.constant 8 : i32
    %0 = arith.muli %arg1, %c8_i32 : i32
    %cst = arith.constant 0.000000e+00 : f32
    %1 = vector.broadcast %cst : f32 to vector<128x128xf32>
    %c0_i32 = arith.constant 0 : i32
    %2 = arith.addi %0, %c0_i32 : i32
    %c0 = arith.constant 0 : index
    %3 = arith.index_cast %2 : i32 to index
    %c0_0 = arith.constant 0 : index
    %c0_1 = arith.constant 0 : index
    %4 = vector.load %arg2[%c0, %3, %c0_0, %c0_1] : memref<1x17x17x48xf32, #tpu.memory_space<vmem>>, vector<1x8x16x48xf32>
    %5 = vector.shape_cast %4 : vector<1x8x16x48xf32> to vector<8x16x48xf32>
    %6 = vector.shape_cast %5 : vector<8x16x48xf32> to vector<128x48xf32>
    %c0_2 = arith.constant 0 : index
    %c0_3 = arith.constant 0 : index
    %c0_4 = arith.constant 0 : index
    %c0_5 = arith.constant 0 : index
    %7 = vector.load %arg3[%c0_2, %c0_3, %c0_4, %c0_5] : memref<2x2x48x128xf32, #tpu.memory_space<vmem>>, vector<1x1x48x128xf32>
    %8 = vector.shape_cast %7 : vector<1x1x48x128xf32> to vector<48x128xf32>
    %cst_6 = arith.constant dense<0.000000e+00> : vector<128x128xf32>
    %9 = tpu.matmul %6, %8, %cst_6 {dimension_numbers = #tpu.dot_dimension_numbers<[1], [0], [0], [1], [0, 0, 1, 1], [], []>} : vector<128x48xf32>, vector<48x128xf32>, vector<128x128xf32> -> vector<128x128xf32>
    %10 = arith.addf %1, %9 : vector<128x128xf32>
    %c0_i32_7 = arith.constant 0 : i32
    %11 = arith.addi %0, %c0_i32_7 : i32
    %c0_8 = arith.constant 0 : index
    %12 = arith.index_cast %11 : i32 to index
    %c1 = arith.constant 1 : index
    %c0_9 = arith.constant 0 : index
    %13 = vector.load %arg2[%c0_8, %12, %c1, %c0_9] : memref<1x17x17x48xf32, #tpu.memory_space<vmem>>, vector<1x8x16x48xf32>
    %14 = vector.shape_cast %13 : vector<1x8x16x48xf32> to vector<8x16x48xf32>
    %15 = vector.shape_cast %14 : vector<8x16x48xf32> to vector<128x48xf32>
    %c0_10 = arith.constant 0 : index
    %c1_11 = arith.constant 1 : index
    %c0_12 = arith.constant 0 : index
    %c0_13 = arith.constant 0 : index
    %16 = vector.load %arg3[%c0_10, %c1_11, %c0_12, %c0_13] : memref<2x2x48x128xf32, #tpu.memory_space<vmem>>, vector<1x1x48x128xf32>
    %17 = vector.shape_cast %16 : vector<1x1x48x128xf32> to vector<48x128xf32>
    %cst_14 = arith.constant dense<0.000000e+00> : vector<128x128xf32>
    %18 = tpu.matmul %15, %17, %cst_14 {dimension_numbers = #tpu.dot_dimension_numbers<[1], [0], [0], [1], [0, 0, 1, 1], [], []>} : vector<128x48xf32>, vector<48x128xf32>, vector<128x128xf32> -> vector<128x128xf32>
    %19 = arith.addf %10, %18 : vector<128x128xf32>
    %c1_i32 = arith.constant 1 : i32
    %20 = arith.addi %0, %c1_i32 : i32
    %c0_15 = arith.constant 0 : index
    %21 = arith.index_cast %20 : i32 to index
    %c0_16 = arith.constant 0 : index
    %c0_17 = arith.constant 0 : index
    %22 = vector.load %arg2[%c0_15, %21, %c0_16, %c0_17] : memref<1x17x17x48xf32, #tpu.memory_space<vmem>>, vector<1x8x16x48xf32>
    %23 = vector.shape_cast %22 : vector<1x8x16x48xf32> to vector<8x16x48xf32>
    %24 = vector.shape_cast %23 : vector<8x16x48xf32> to vector<128x48xf32>
    %c1_18 = arith.constant 1 : index
    %c0_19 = arith.constant 0 : index
    %c0_20 = arith.constant 0 : index
    %c0_21 = arith.constant 0 : index
    %25 = vector.load %arg3[%c1_18, %c0_19, %c0_20, %c0_21] : memref<2x2x48x128xf32, #tpu.memory_space<vmem>>, vector<1x1x48x128xf32>
    %26 = vector.shape_cast %25 : vector<1x1x48x128xf32> to vector<48x128xf32>
    %cst_22 = arith.constant dense<0.000000e+00> : vector<128x128xf32>
    %27 = tpu.matmul %24, %26, %cst_22 {dimension_numbers = #tpu.dot_dimension_numbers<[1], [0], [0], [1], [0, 0, 1, 1], [], []>} : vector<128x48xf32>, vector<48x128xf32>, vector<128x128xf32> -> vector<128x128xf32>
    %28 = arith.addf %19, %27 : vector<128x128xf32>
    %c1_i32_23 = arith.constant 1 : i32
    %29 = arith.addi %0, %c1_i32_23 : i32
    %c0_24 = arith.constant 0 : index
    %30 = arith.index_cast %29 : i32 to index
    %c1_25 = arith.constant 1 : index
    %c0_26 = arith.constant 0 : index
    %31 = vector.load %arg2[%c0_24, %30, %c1_25, %c0_26] : memref<1x17x17x48xf32, #tpu.memory_space<vmem>>, vector<1x8x16x48xf32>
    %32 = vector.shape_cast %31 : vector<1x8x16x48xf32> to vector<8x16x48xf32>
    %33 = vector.shape_cast %32 : vector<8x16x48xf32> to vector<128x48xf32>
    %c1_27 = arith.constant 1 : index
    %c1_28 = arith.constant 1 : index
    %c0_29 = arith.constant 0 : index
    %c0_30 = arith.constant 0 : index
    %34 = vector.load %arg3[%c1_27, %c1_28, %c0_29, %c0_30] : memref<2x2x48x128xf32, #tpu.memory_space<vmem>>, vector<1x1x48x128xf32>
    %35 = vector.shape_cast %34 : vector<1x1x48x128xf32> to vector<48x128xf32>
    %cst_31 = arith.constant dense<0.000000e+00> : vector<128x128xf32>
    %36 = tpu.matmul %33, %35, %cst_31 {dimension_numbers = #tpu.dot_dimension_numbers<[1], [0], [0], [1], [0, 0, 1, 1], [], []>} : vector<128x48xf32>, vector<48x128xf32>, vector<128x128xf32> -> vector<128x128xf32>
    %37 = arith.addf %28, %36 : vector<128x128xf32>
    %c0_32 = arith.constant 0 : index
    %c0_33 = arith.constant 0 : index
    %38 = vector.load %arg4[%c0_32, %c0_33] : memref<1x128xf32, #tpu.memory_space<vmem>>, vector<1x128xf32>
    %39 = vector.broadcast %38 : vector<1x128xf32> to vector<128x128xf32>
    %40 = arith.addf %37, %39 : vector<128x128xf32>
    %cst_34 = arith.constant dense<0.000000e+00> : vector<128xf32>
    %41 = vector.multi_reduction <add>, %40, %cst_34 [1] : vector<128x128xf32> to vector<128xf32>
    %42 = vector.shape_cast %41 : vector<128xf32> to vector<128x1xf32>
    %cst_35 = arith.constant 1.280000e+02 : f32
    %43 = vector.broadcast %cst_35 : f32 to vector<128x1xf32>
    %44 = arith.divf %42, %43 : vector<128x1xf32>
    %45 = vector.broadcast %44 : vector<128x1xf32> to vector<128x128xf32>
    %46 = arith.subf %40, %45 : vector<128x128xf32>
    %47 = arith.mulf %46, %46 : vector<128x128xf32>
    %cst_36 = arith.constant dense<0.000000e+00> : vector<128xf32>
    %48 = vector.multi_reduction <add>, %47, %cst_36 [1] : vector<128x128xf32> to vector<128xf32>
    %49 = vector.shape_cast %48 : vector<128xf32> to vector<128x1xf32>
    %cst_37 = arith.constant 1.280000e+02 : f32
    %50 = vector.broadcast %cst_37 : f32 to vector<128x1xf32>
    %51 = arith.divf %49, %50 : vector<128x1xf32>
    %52 = vector.broadcast %44 : vector<128x1xf32> to vector<128x128xf32>
    %53 = arith.subf %40, %52 : vector<128x128xf32>
    %cst_38 = arith.constant 9.99999997E-7 : f32
    %54 = vector.broadcast %cst_38 : f32 to vector<128x1xf32>
    %55 = arith.addf %51, %54 : vector<128x1xf32>
    %56 = math.rsqrt %55 : vector<128x1xf32>
    %57 = vector.broadcast %56 : vector<128x1xf32> to vector<128x128xf32>
    %58 = arith.mulf %53, %57 : vector<128x128xf32>
    %c0_39 = arith.constant 0 : index
    %c0_40 = arith.constant 0 : index
    %59 = vector.load %arg5[%c0_39, %c0_40] : memref<1x128xf32, #tpu.memory_space<vmem>>, vector<1x128xf32>
    %60 = vector.broadcast %59 : vector<1x128xf32> to vector<128x128xf32>
    %61 = arith.mulf %58, %60 : vector<128x128xf32>
    %c0_41 = arith.constant 0 : index
    %c0_42 = arith.constant 0 : index
    %62 = vector.load %arg6[%c0_41, %c0_42] : memref<1x128xf32, #tpu.memory_space<vmem>>, vector<1x128xf32>
    %63 = vector.broadcast %62 : vector<1x128xf32> to vector<128x128xf32>
    %64 = arith.addf %61, %63 : vector<128x128xf32>
    %65 = tpu.transpose %64, [1, 0] : vector<128x128xf32> -> vector<128x128xf32>
    %c0_43 = arith.constant 0 : index
    %c0_44 = arith.constant 0 : index
    %c0_45 = arith.constant 0 : index
    %66 = vector.load %arg7[%c0_43, %c0_44, %c0_45] : memref<1x128x128xf32, #tpu.memory_space<vmem>>, vector<1x128x128xf32>
    %67 = vector.shape_cast %66 : vector<1x128x128xf32> to vector<128x128xf32>
    %68 = vector.shape_cast %65 : vector<128x128xf32> to vector<1x128x128xf32>
    tpu.vector_store %arg7[%c0_43, %c0_44, %c0_45], %68 {strides = array<i32>} : memref<1x128x128xf32, #tpu.memory_space<vmem>>, vector<1x128x128xf32>,
    return
  }
  func.func @transform_0(%arg0: i32, %arg1: i32) -> (i32, i32, i32, i32) {
    %c0_i32 = arith.constant 0 : i32
    %c0_i32_0 = arith.constant 0 : i32
    %c0_i32_1 = arith.constant 0 : i32
    %c0_i32_2 = arith.constant 0 : i32
    return %arg0, %c0_i32, %c0_i32_0, %c0_i32_1 : i32, i32, i32, i32
  }
  func.func @transform_1(%arg0: i32, %arg1: i32) -> (i32, i32, i32, i32) {
    %c0_i32 = arith.constant 0 : i32
    %c0_i32_0 = arith.constant 0 : i32
    %c0_i32_1 = arith.constant 0 : i32
    %c0_i32_2 = arith.constant 0 : i32
    %c0_i32_3 = arith.constant 0 : i32
    return %c0_i32, %c0_i32_0, %c0_i32_1, %c0_i32_2 : i32, i32, i32, i32
  }
  func.func @transform_2(%arg0: i32, %arg1: i32) -> (i32, i32) {
    %c0_i32 = arith.constant 0 : i32
    %c0_i32_0 = arith.constant 0 : i32
    %c0_i32_1 = arith.constant 0 : i32
    return %c0_i32, %c0_i32_0 : i32, i32
  }
  func.func @transform_3(%arg0: i32, %arg1: i32) -> (i32, i32) {
    %c0_i32 = arith.constant 0 : i32
    %c0_i32_0 = arith.constant 0 : i32
    %c0_i32_1 = arith.constant 0 : i32
    return %c0_i32, %c0_i32_0 : i32, i32
  }
  func.func @transform_4(%arg0: i32, %arg1: i32) -> (i32, i32) {
    %c0_i32 = arith.constant 0 : i32
    %c0_i32_0 = arith.constant 0 : i32
    %c0_i32_1 = arith.constant 0 : i32
    return %c0_i32, %c0_i32_0 : i32, i32
  }
  func.func @transform_5(%arg0: i32, %arg1: i32) -> (i32, i32, i32) {
    %c0_i32 = arith.constant 0 : i32
    %c0_i32_0 = arith.constant 0 : i32
    return %arg0, %c0_i32, %arg1 : i32, i32, i32
  }
}

</mosaic_0001>

<bundles_post_ra>
// kernel: overlap_patch_embed.1
= control target key start
LH: loop header
LB: loop body
LE: loop exit
PB: predicated region body
PF: predicated region fallthrough
CT: control target
= control target key end

     0   :  { %s2238_s18 = smov 0   ;;  %s2240_s19 = smov 0   ;;  %s2787_s0 = inlined_call_operand.vmem [shape: f32[2,17,17,48], index: 0, kind: input, shape index: {}]   ;;  %s2788_s1 = inlined_call_operand.vmem [shape: f32[2,2,48,128], index: 1, kind: input, shape index: {}]   ;;  %s2789_s2 = inlined_call_operand.vmem [shape: f32[1,128], index: 2, kind: input, shape index: {}]   ;;  %s2790_s3 = inlined_call_operand.vmem [shape: f32[1,128], index: 3, kind: input, shape index: {}]   ;;  %s2791_s4 = inlined_call_operand.vmem [shape: f32[1,128], index: 4, kind: input, shape index: {}]   ;;  %s2792_s5 = inlined_call_operand.vmem [shape: f32[2,128,256], index: 5, kind: output, shape index: {}]  }
   0x1   :  { %s2242_s20 = smov 0   ;;  %s2244_s21 = smov 0  }
   0x2   :  { %s2246_s22 = smov 0   ;;  %s2248_s23 = smov 0  }
   0x3   :  { %s2250_s24 = smov 0  }
   0x4 LB: > { %s24_s25 = sadd.s32 1, %s2198_s22  ;;  %s27_s26 = sadd.s32 1, %s2202_s23  ;;  %s2206_s24 = sphi %s2250_s24, %s15_s24   ;;  %s2202_s23 = sphi %s2248_s23, %s2799_s23   ;;  %s2198_s22 = sphi %s2246_s22, %s2798_s22   ;;  %s2194_s21 = sphi %s2244_s21, %s2797_s21   ;;  %s2190_s20 = sphi %s2242_s20, %s2796_s20   ;;  %s2186_s19 = sphi %s2240_s19, %s2795_s19   ;;  %s2182_s18 = sphi %s2238_s18, %s2794_s18  }
   0x5   : > { %p25_p0 = scmp.ge.s32.totalorder %s24_s25, 2  ;;  %s1602_s27 = sadd.s32 4294967295, %s2206_s24  }
   0x6   : > { %p156_p1 = scmp.ne.s32.totalorder %s2186_s19, %s2182_s18  ;;  %p157_p2 = scmp.eq.s32.totalorder %s1602_s27, 3 }
   0x7   : > { %s2801_s25 = smov (%p25_p0, %s24_s25), 0  ;;  %s2803_s26 = smov (!%p25_p0, %s27_s26), %s2202_s23 }
   0x8   : > { %s142_s28 = ssub.s32 %s2198_s22, %s2801_s25  ;;  %p29_p3 = scmp.ge.s32.totalorder %s2803_s26, 2 }
   0x9   : > { %p1606_p4 = scmp.ge.s32.totalorder %s2206_s24, 1  ;;  %p2284_p5 = por %p157_p2, %p156_p1 }
   0xa   : > { %p201_p6 = scmp.lt.s32.totalorder %s2206_s24, 5  ;;  %s2805_s26 = smov (%p29_p3, %s2803_s26), 0 }
   0xb   : > { %s141_s30 = ssub.s32 %s2202_s23, %s2805_s26  ;;  %s146_s7 = sadd.s32 1, %s2186_s19 }
   0xc   : > { %p202_p7 = pnand %p1606_p4, %p201_p6  ;;  %s143_s6 = sor.u32 %s142_s28, %s141_s30 }
   0xd   : > { %p144_p8 = scmp.eq.s32.totalorder %s143_s6, 0  ;;  %v1611_v0 = vld [vmem:[%s2788_s1 + $0x30] sm:$0xff] (!%p202_p7)  ;;  %v1612_v1 = vld [vmem:[%s2788_s1 + $0x38] sm:$0xff] (!%p202_p7)  ;;  %v1667_v2 = vld [vmem:[%s2788_s1 + $0x60] sm:$0xff] (!%p202_p7)  ;;  %p228_p9 = scmp.lt.s32.totalorder (!%p202_p7), %s2194_s21, 1  ;;  %vm281_vm0 = vcmask (!%p202_p7), 392192  }
   0xe   : > { %205 = sbr.rel (%p202_p7) target bundleno = 788 (0x314), region = 40  ;;  %v1967_v3 = vpack.c.bf16 (!%p202_p7), %v1612_v1, %v1611_v0  ;;  %v1668_v4 = vld [vmem:[%s2788_s1 + $0x68] sm:$0xff] (!%p202_p7)  ;;  %v1613_v5 = vld [vmem:[%s2788_s1 + $0x40] sm:$0xff] (!%p202_p7)  ;;  %v1669_v9 = vld [vmem:[%s2788_s1 + $0x70] sm:$0xff] (!%p202_p7)  ;;  %s225_s15 = sand.u32 (!%p202_p7), 1, %s2182_s18  }
   0xf   : > { %s2295_s8 = scalar_select %p144_p8, %s2186_s19, %s146_s7  }
  0x10   : > { %v1614_v6 = vld [vmem:[%s2788_s1 + $0x48] sm:$0xff] (!%p202_p7)  ;;  %v1991_v7 = vpack.c.bf16 (!%p202_p7), %v1668_v4, %v1667_v2  ;;  %v1670_v10 = vld [vmem:[%s2788_s1 + $0x78] sm:$0xff] (!%p202_p7)  ;;  %v1615_v11 = vld [vmem:[%s2788_s1 + $0x50] sm:$0xff] (!%p202_p7)  ;;  %1968 = vmatprep.subr.bf16.mxu1 (!%p202_p7), %v1967_v3  ;;  %s1610_s30 = smul.u32 (!%p202_p7), 192, %s2190_s20 }
  0x11   : > { %v1971_v8 = vpack.c.bf16 (!%p202_p7), %v1614_v6, %v1613_v5  ;;  %v1995_v12 = vpack.c.bf16 (!%p202_p7), %v1670_v10, %v1669_v9  ;;  %v1616_v13 = vld [vmem:[%s2788_s1 + $0x58] sm:$0xff] (!%p202_p7)  ;;  %v1671_v14 = vld [vmem:[%s2788_s1 + $0x80] sm:$0xff] (!%p202_p7)  ;;  %v1672_v15 = vld [vmem:[%s2788_s1 + $0x88] sm:$0xff] (!%p202_p7)  ;;  %1970 = vmatpush3.bf16.msra.mxu1 (!%p202_p7), %v1967_v3 }
  0x12   : > { %1992 = vmatprep.subr.bf16.mxu0 (!%p202_p7), %v1991_v7  ;;  %v1975_v16 = vpack.c.bf16 (!%p202_p7), %v1616_v13, %v1615_v11  ;;  %v1999_v17 = vpack.c.bf16 (!%p202_p7), %v1672_v15, %v1671_v14  ;;  %v252_v18 = vld [vmem:[%s2788_s1] sm:$0xff] (!%p202_p7)  ;;  %v253_v19 = vld [vmem:[%s2788_s1 + $0x8] sm:$0xff] (!%p202_p7)  ;;  %v1705_v20 = vld [vmem:[%s2788_s1 + $0x90] sm:$0xff] (!%p202_p7) }
  0x13   : > { %1994 = vmatpush3.bf16.msra.mxu0 (!%p202_p7), %v1991_v7  ;;  %1972 = vmatprep.subr.bf16.mxu1 (!%p202_p7), %v1971_v8  ;;  %v1706_v21 = vld [vmem:[%s2788_s1 + $0x98] sm:$0xff] (!%p202_p7)  ;;  %v1979_v24 = vpack.c.bf16 (!%p202_p7), %v253_v19, %v252_v18  ;;  %v254_v26 = vld [vmem:[%s2788_s1 + $0x10] sm:$0xff] (!%p202_p7)  ;;  %v1707_v29 = vld [vmem:[%s2788_s1 + $0xa0] sm:$0xff] (!%p202_p7) }
  0x14   : > { %1996 = vmatprep.subr.bf16.mxu0 (!%p202_p7), %v1995_v12  ;;  %v2003_v25 = vpack.c.bf16 (!%p202_p7), %v1706_v21, %v1705_v20  ;;  %v255_v27 = vld [vmem:[%s2788_s1 + $0x18] sm:$0xff] (!%p202_p7)  ;;  %v1708_v30 = vld [vmem:[%s2788_s1 + $0xa8] sm:$0xff] (!%p202_p7)  ;;  %v256_v36 = vld [vmem:[%s2788_s1 + $0x20] sm:$0xff] (!%p202_p7) }
  0x15   : > { %s229_s13 = scalar_select %p228_p9, %s2194_s21, 1  ;;  %1974 = vmatpush3.bf16.msra.mxu1 %v1971_v8  ;;  %v1983_v33 = vpack.c.bf16 %v255_v27, %v254_v26  ;;  %v2007_v35 = vpack.c.bf16 %v1708_v30, %v1707_v29  ;;  %v257_v37 = vld [vmem:[%s2788_s1 + $0x28] sm:$0xff]  ;;  %v1709_v39 = vld [vmem:[%s2788_s1 + $0xb0] sm:$0xff]  ;;  %v1710_v40 = vld [vmem:[%s2788_s1 + $0xb8] sm:$0xff] }
  0x16   : > { %1976 = vmatprep.subr.bf16.mxu1 %v1975_v16  ;;  %v1987_v44 = vpack.c.bf16 %v257_v37, %v256_v36  ;;  %v2011_v45 = vpack.c.bf16 %v1710_v40, %v1709_v39  ;;  %v2520_v13 = vld [vmem:[%s2789_s2] ss:$0 sm:$0xff]  ;;  %s1731_s18 = sshll.u32 (%p2284_p5), %s2194_s21, 5 }
  0x17   : > { %s2063_s6 = smul.u32 408, %s229_s13  ;;  %1998 = vmatpush3.bf16.msra.mxu0 %v1995_v12  ;;  %s1607_s13 = sshll.u32 %s225_s15, 7 }
  0x18   : > { %2000 = vmatprep.subr.bf16.mxu0 %v1999_v17  ;;  %s2725_s17 = scalar_lea.vmem [#allocation2], %s1607_s13  ;;  %s1437_s29 = sadd.s32 (%p2284_p5), %s2190_s20, %s1731_s18 }
  0x19   : > { %s232_s10 = scalar_lea.vmem %s2787_s0, %s2063_s6  ;;  %1978 = vmatpush3.bf16.msra.mxu1 %v1975_v16  ;;  %s1732_s27 = sshll.u32 (%p2284_p5), %s1437_s29, 3 }
  0x1a   : > { %s2345_s16 = scalar_lea.vmem %s232_s10, %s1610_s30  ;;  %1980 = vmatprep.subr.bf16.mxu1 %v1979_v24  ;;  %s1439_s6 = scalar_lea.vmem (%p2284_p5), %s2792_s5, %s1732_s27 }
  0x1b   : > { %v258_v22 = vld [vmem:[%s2345_s16 + $0x1] sm:$0xff]  ;;  %v2355_v23 = vld [vmem:[%s2345_s16 + $0x18] sm:$0xff]  ;;  %v259_v28 = vld [vmem:[%s2345_s16 + $0x9] sm:$0xff]  ;;  %2002 = vmatpush3.bf16.msra.mxu0 %v1999_v17 }
  0x1c   : > { %1835 = vmatprep.mubr.msk.f32.mxu1 %vm281_vm0, %v258_v22  ;;  %1907 = vmatprep.mubr.msk.f32.mxu0 %vm281_vm0, %v2355_v23  ;;  %v2374_v31 = vld [vmem:[%s2345_s16 + $0x20] sm:$0xff]  ;;  %v2381_v34 = vld [vmem:[%s2345_s16 + $0x30] sm:$0xff]  ;;  %v2403_v41 = vld [vmem:[%s2345_s16 + $0x38] sm:$0xff] }
  0x1d   : > { %2004 = vmatprep.subr.bf16.mxu0 %v2003_v25  ;;  %v2377_v32 = vld [vmem:[%s2345_s16 + $0x19] sm:$0xff]  ;;  %1836 = vmatmul.mubr.msk.f32.vlgmr.msra.gmra.mrb[0].mxu1 %vm281_vm0, %v259_v28  ;;  %v2392_v38 = vld [vmem:[%s2345_s16 + $0x21] sm:$0xff]  ;;  %v2406_v42 = vld [vmem:[%s2345_s16 + $0x31] sm:$0xff] }
  0x1e   : > { %1908 = vmatmul.mubr.msk.f32.vlgmr.msra.gmra.mrb[0].mxu0 %vm281_vm0, %v2374_v31  ;;  %1982 = vmatpush3.bf16.msra.mxu1 %v1979_v24  ;;  %v2411_v43 = vld [vmem:[%s2345_s16 + $0x48] sm:$0xff]  ;;  %v263_v46 = vld [vmem:[%s2345_s16 + $0x39] sm:$0xff]  ;;  %v2423_v47 = vld [vmem:[%s2345_s16 + $0x50] sm:$0xff] }
  0x1f   : > { %2006 = vmatpush3.bf16.msra.mxu0 %v2003_v25  ;;  %1838 = vmatprep.mubr.msk.f32.mxu1 %vm281_vm0, %v2377_v32  ;;  %v264_v48 = vld [vmem:[%s2345_s16 + $0x49] sm:$0xff]  ;;  %v2427_v49 = vld [vmem:[%s2345_s16 + $0x60] sm:$0xff]  ;;  %v265_v50 = vld [vmem:[%s2345_s16 + $0x51] sm:$0xff] }
  0x20   : > { %1910 = vmatprep.mubr.msk.f32.mxu0 %vm281_vm0, %v2381_v34  ;;  %1984 = vmatprep.subr.bf16.mxu1 %v1983_v33  ;;  %v1658_v51 = vld [vmem:[%s2345_s16 + $0x68] sm:$0xff]  ;;  %v1659_v53 = vld [vmem:[%s2345_s16 + $0x78] sm:$0xff]  ;;  %v1660_v55 = vld [vmem:[%s2345_s16 + $0x80] sm:$0xff] }
  0x21   : > { %1839 = vmatmul.mubr.msk.f32.gmra.mrb[2].mxu1 %vm281_vm0, %v2392_v38  ;;  %2008 = vmatprep.subr.bf16.mxu0 %v2007_v35  ;;  %v266_v52 = vld [vmem:[%s2345_s16 + $0x61] sm:$0xff]  ;;  %v267_v54 = vld [vmem:[%s2345_s16 + $0x69] sm:$0xff]  ;;  %v268_v56 = vld [vmem:[%s2345_s16 + $0x79] sm:$0xff] }
  0x22   : > { %1911 = vmatmul.mubr.msk.f32.gmra.mrb[2].mxu0 %vm281_vm0, %v2403_v41  ;;  %1841 = vmatprep.mubr.msk.f32.mxu1 %vm281_vm0, %v2406_v42  ;;  %v1661_v57 = vld [vmem:[%s2345_s16 + $0x90] sm:$0xff]  ;;  %v269_v58 = vld [vmem:[%s2345_s16 + $0x81] sm:$0xff]  ;;  %v1662_v59 = vld [vmem:[%s2345_s16 + $0x98] sm:$0xff] }
  0x23   : > { %1913 = vmatprep.mubr.msk.f32.mxu0 %vm281_vm0, %v2411_v43  ;;  %1986 = vmatpush3.bf16.msra.mxu1 %v1983_v33  ;;  %v270_v60 = vld [vmem:[%s2345_s16 + $0x91] sm:$0xff]  ;;  %v1663_v61 = vld [vmem:[%s2345_s16 + $0xa8] sm:$0xff]  ;;  %v271_v62 = vld [vmem:[%s2345_s16 + $0x99] sm:$0xff] }
  0x24   : > { %2010 = vmatpush3.bf16.msra.mxu0 %v2007_v35  ;;  %1988 = vmatprep.subr.bf16.mxu1 %v1987_v44  ;;  %v1664_v63 = vld [vmem:[%s2345_s16 + $0xb0] sm:$0xff]  ;;  %v1665_v1 = vld [vmem:[%s2345_s16 + $0xc0] sm:$0xff]  ;;  %v1666_v3 = vld [vmem:[%s2345_s16 + $0xc8] sm:$0xff] }
  0x25   : > { %1842 = vmatmul.mubr.msk.f32.gmra.mrb[4].mxu1 %vm281_vm0, %v263_v46  ;;  %2012 = vmatprep.subr.bf16.mxu0 %v2011_v45  ;;  %v272_v0 = vld [vmem:[%s2345_s16 + $0xa9] sm:$0xff]  ;;  %v273_v2 = vld [vmem:[%s2345_s16 + $0xb1] sm:$0xff]  ;;  %v236_v4 = vld [vmem:[%s2345_s16] sm:$0xff] }
  0x26   : > { %1914 = vmatmul.mubr.msk.f32.gmra.mrb[4].mxu0 %vm281_vm0, %v2423_v47  ;;  %1844 = vmatprep.mubr.msk.f32.mxu1 %vm281_vm0, %v264_v48  ;;  %v237_v5 = vld [vmem:[%s2345_s16 + $0x8] sm:$0xff] }
  0x27   : > { %1916 = vmatprep.mubr.msk.f32.mxu0 %vm281_vm0, %v2427_v49  ;;  %1990 = vmatpush3.bf16.msra.mxu1 %v1987_v44  ;;  %v1703_v6 = vld [vmem:[%s2345_s16 + $0xc1] sm:$0xff]  ;;  %v1704_v7 = vld [vmem:[%s2345_s16 + $0xc9] sm:$0xff] }
  0x28   : > { %2014 = vmatpush3.bf16.msra.mxu0 %v2011_v45 }
  0x29   : > { %1845 = vmatmul.mubr.msk.f32.gmra.mrb[6].mxu1 %vm281_vm0, %v265_v50 }
  0x2a   : > { %1917 = vmatmul.mubr.msk.f32.gmra.mrb[6].mxu0 %vm281_vm0, %v1658_v51  ;;  %1847 = vmatprep.mubr.msk.f32.mxu1 %vm281_vm0, %v266_v52 }
  0x2b   : > { %1919 = vmatprep.mubr.msk.f32.mxu0 %vm281_vm0, %v1659_v53 }
  0x2d   : > { %1848 = vmatmul.mubr.msk.f32.gmra.mrb[8].mxu1 %vm281_vm0, %v267_v54 }
  0x2e   : > { %1920 = vmatmul.mubr.msk.f32.gmra.mrb[8].mxu0 %vm281_vm0, %v1660_v55  ;;  %1850 = vmatprep.mubr.msk.f32.mxu1 %vm281_vm0, %v268_v56 }
  0x2f   : > { %1922 = vmatprep.mubr.msk.f32.mxu0 %vm281_vm0, %v1661_v57 }
  0x31   : > { %1851 = vmatmul.mubr.msk.f32.gmra.mrb[10].mxu1 %vm281_vm0, %v269_v58 }
  0x32   : > { %1923 = vmatmul.mubr.msk.f32.gmra.mrb[10].mxu0 %vm281_vm0, %v1662_v59  ;;  %1853 = vmatprep.mubr.msk.f32.mxu1 %vm281_vm0, %v270_v60 }
  0x33   : > { %1925 = vmatprep.mubr.msk.f32.mxu0 %vm281_vm0, %v1663_v61 }
  0x35   : > { %1854 = vmatmul.mubr.msk.f32.gmra.mrb[12].mxu1 %vm281_vm0, %v271_v62 }
  0x36   : > { %1926 = vmatmul.mubr.msk.f32.gmra.mrb[12].mxu0 %vm281_vm0, %v1664_v63  ;;  %1856 = vmatprep.mubr.msk.f32.mxu1 %vm281_vm0, %v272_v0 }
  0x37   : > { %1928 = vmatprep.mubr.msk.f32.mxu0 %vm281_vm0, %v1665_v1 }
  0x39   : > { %1857 = vmatmul.mubr.msk.f32.gmra.mrb[14].mxu1 %vm281_vm0, %v273_v2 }
  0x3a   : > { %1929 = vmatmul.mubr.msk.f32.gmra.mrb[14].mxu0 %vm281_vm0, %v1666_v3  ;;  %1871 = vmatprep.mubr.msk.f32.mxu1 %vm281_vm0, %v236_v4 }
  0x3b   : > { %1943 = vmatprep.mubr.msk.f32.mxu0 %vm281_vm0, %v2377_v32 }
  0x3d   : > { %1872 = vmatmul.mubr.msk.f32.vlgmr.msra.gmra.mrb[0].mxu1 %vm281_vm0, %v237_v5 }
  0x3e   : > { %1944 = vmatmul.mubr.msk.f32.vlgmr.msra.gmra.mrb[0].mxu0 %vm281_vm0, %v2392_v38  ;;  %1874 = vmatprep.mubr.msk.f32.mxu1 %vm281_vm0, %v2355_v23 }
  0x3f   : > { %1946 = vmatprep.mubr.msk.f32.mxu0 %vm281_vm0, %v2406_v42 }
  0x41   : > { %1875 = vmatmul.mubr.msk.f32.gmra.mrb[2].mxu1 %vm281_vm0, %v2374_v31 }
  0x42   : > { %1947 = vmatmul.mubr.msk.f32.gmra.mrb[2].mxu0 %vm281_vm0, %v263_v46  ;;  %1877 = vmatprep.mubr.msk.f32.mxu1 %vm281_vm0, %v2381_v34 }
  0x43   : > { %1949 = vmatprep.mubr.msk.f32.mxu0 %vm281_vm0, %v264_v48 }
  0x45   : > { %1878 = vmatmul.mubr.msk.f32.gmra.mrb[4].mxu1 %vm281_vm0, %v2403_v41 }
  0x46   : > { %1950 = vmatmul.mubr.msk.f32.gmra.mrb[4].mxu0 %vm281_vm0, %v265_v50  ;;  %1880 = vmatprep.mubr.msk.f32.mxu1 %vm281_vm0, %v2411_v43 }
  0x47   : > { %1952 = vmatprep.mubr.msk.f32.mxu0 %vm281_vm0, %v266_v52 }
  0x49   : > { %1881 = vmatmul.mubr.msk.f32.gmra.mrb[6].mxu1 %vm281_vm0, %v2423_v47 }
  0x4a   : > { %1953 = vmatmul.mubr.msk.f32.gmra.mrb[6].mxu0 %vm281_vm0, %v267_v54  ;;  %1883 = vmatprep.mubr.msk.f32.mxu1 %vm281_vm0, %v2427_v49 }
  0x4b   : > { %1955 = vmatprep.mubr.msk.f32.mxu0 %vm281_vm0, %v268_v56 }
  0x4d   : > { %1884 = vmatmul.mubr.msk.f32.gmra.mrb[8].mxu1 %vm281_vm0, %v1658_v51 }
  0x4e   : > { %1956 = vmatmul.mubr.msk.f32.gmra.mrb[8].mxu0 %vm281_vm0, %v269_v58  ;;  %1886 = vmatprep.mubr.msk.f32.mxu1 %vm281_vm0, %v1659_v53 }
  0x4f   : > { %1958 = vmatprep.mubr.msk.f32.mxu0 %vm281_vm0, %v270_v60 }
  0x51   : > { %1887 = vmatmul.mubr.msk.f32.gmra.mrb[10].mxu1 %vm281_vm0, %v1660_v55 }
  0x52   : > { %1959 = vmatmul.mubr.msk.f32.gmra.mrb[10].mxu0 %vm281_vm0, %v271_v62  ;;  %1889 = vmatprep.mubr.msk.f32.mxu1 %vm281_vm0, %v1661_v57 }
  0x53   : > { %1961 = vmatprep.mubr.msk.f32.mxu0 %vm281_vm0, %v272_v0 }
  0x55   : > { %1890 = vmatmul.mubr.msk.f32.gmra.mrb[12].mxu1 %vm281_vm0, %v1662_v59 }
  0x56   : > { %1962 = vmatmul.mubr.msk.f32.gmra.mrb[12].mxu0 %vm281_vm0, %v273_v2  ;;  %1892 = vmatprep.mubr.msk.f32.mxu1 %vm281_vm0, %v1663_v61 }
  0x57   : > { %1964 = vmatprep.mubr.msk.f32.mxu0 %vm281_vm0, %v1703_v6 }
  0x59   : > { %1893 = vmatmul.mubr.msk.f32.gmra.mrb[14].mxu1 %vm281_vm0, %v1664_v63 }
  0x5a   : > { %1965 = vmatmul.mubr.msk.f32.gmra.mrb[14].mxu0 %vm281_vm0, %v1704_v7 }
 0x110   : > { %v1873_v8 = vpop.f32.mrb[0].mxu1 }
 0x111   : > { %v1945_v9 = vpop.f32.mrb[0].mxu0  ;;  %v589_v10 = vpop.f32.mrb[1].mxu1 }
 0x112   : > { %v2015_v11 = vadd.f32 %v1945_v9, %v1873_v8  ;;  %v1040_v12 = vpop.f32.mrb[1].mxu0 }
 0x113   : > { %v2016_v14 = vadd.f32 %v1040_v12, %v589_v10 }
 0x114   : > { %v1876_v15 = vpop.f32.mrb[2].mxu1  ;;  %v2527_v25 = vadd.f32 %v2015_v11, %v2520_v13 }
 0x115   : > { %v1948_v16 = vpop.f32.mrb[2].mxu0  ;;  %v599_v17 = vpop.f32.mrb[3].mxu1  ;;  %v2523_v18 = vadd.f32 %v2016_v14, %v2520_v13 }
 0x116   : > { %v2017_v19 = vadd.f32 %v1948_v16, %v1876_v15  ;;  %v1050_v20 = vpop.f32.mrb[3].mxu0 }
 0x117   : > { %v2018_v21 = vadd.f32 %v1050_v20, %v599_v17  ;;  %1158 = vadd.xlane.f32.xlu0 %v2523_v18 }
 0x118   : > { %v1879_v22 = vpop.f32.mrb[4].mxu1  ;;  %v2535_v33 = vadd.f32 %v2017_v19, %v2520_v13 }
 0x119   : > { %v1951_v23 = vpop.f32.mrb[4].mxu0  ;;  %v609_v24 = vpop.f32.mrb[5].mxu1  ;;  %v2530_v26 = vadd.f32 %v2018_v21, %v2520_v13 }
 0x11a   : > { %v2019_v27 = vadd.f32 %v1951_v23, %v1879_v22  ;;  %v1060_v28 = vpop.f32.mrb[5].mxu0 }
 0x11b   : > { %v2020_v29 = vadd.f32 %v1060_v28, %v609_v24  ;;  %1160 = vadd.xlane.f32.xlu0 %v2527_v25  ;;  %1162 = vadd.xlane.f32.xlu1 %v2530_v26 }
 0x11c   : > { %v1882_v30 = vpop.f32.mrb[6].mxu1  ;;  %v2543_v41 = vadd.f32 %v2019_v27, %v2520_v13 }
 0x11d   : > { %v1954_v31 = vpop.f32.mrb[6].mxu0  ;;  %v619_v32 = vpop.f32.mrb[7].mxu1  ;;  %v2538_v34 = vadd.f32 %v2020_v29, %v2520_v13 }
 0x11e   : > { %v2021_v35 = vadd.f32 %v1954_v31, %v1882_v30  ;;  %v1070_v36 = vpop.f32.mrb[7].mxu0 }
 0x11f   : > { %v2022_v37 = vadd.f32 %v1070_v36, %v619_v32  ;;  %1164 = vadd.xlane.f32.xlu1 %v2535_v33  ;;  %1166 = vadd.xlane.f32.xlu0 %v2538_v34 }
 0x120   : > { %v1885_v38 = vpop.f32.mrb[8].mxu1  ;;  %v2551_v49 = vadd.f32 %v2021_v35, %v2520_v13 }
 0x121   : > { %v1957_v39 = vpop.f32.mrb[8].mxu0  ;;  %v629_v40 = vpop.f32.mrb[9].mxu1  ;;  %v2546_v42 = vadd.f32 %v2022_v37, %v2520_v13 }
 0x122   : > { %v2023_v43 = vadd.f32 %v1957_v39, %v1885_v38  ;;  %v1080_v44 = vpop.f32.mrb[9].mxu0 }
 0x123   : > { %v2024_v45 = vadd.f32 %v1080_v44, %v629_v40  ;;  %1168 = vadd.xlane.f32.xlu1 %v2543_v41  ;;  %1170 = vadd.xlane.f32.xlu0 %v2546_v42 }
 0x124   : > { %v1888_v46 = vpop.f32.mrb[10].mxu1  ;;  %v2559_v57 = vadd.f32 %v2023_v43, %v2520_v13 }
 0x125   : > { %v1960_v47 = vpop.f32.mrb[10].mxu0  ;;  %v639_v48 = vpop.f32.mrb[11].mxu1  ;;  %v2554_v50 = vadd.f32 %v2024_v45, %v2520_v13 }
 0x126   : > { %v2025_v51 = vadd.f32 %v1960_v47, %v1888_v46  ;;  %v1090_v52 = vpop.f32.mrb[11].mxu0 }
 0x127   : > { %v2026_v53 = vadd.f32 %v1090_v52, %v639_v48  ;;  %1172 = vadd.xlane.f32.xlu1 %v2551_v49  ;;  %1174 = vadd.xlane.f32.xlu0 %v2554_v50 }
 0x128   : > { %v1891_v54 = vpop.f32.mrb[12].mxu1  ;;  %v2567_v1 = vadd.f32 %v2025_v51, %v2520_v13 }
 0x129   : > { %v1963_v55 = vpop.f32.mrb[12].mxu0  ;;  %v649_v56 = vpop.f32.mrb[13].mxu1  ;;  %v2562_v58 = vadd.f32 %v2026_v53, %v2520_v13 }
 0x12a   : > { %v2027_v59 = vadd.f32 %v1963_v55, %v1891_v54  ;;  %v1100_v60 = vpop.f32.mrb[13].mxu0 }
 0x12b   : > { %v2028_v61 = vadd.f32 %v1100_v60, %v649_v56  ;;  %1176 = vadd.xlane.f32.xlu1 %v2559_v57  ;;  %1178 = vadd.xlane.f32.xlu0 %v2562_v58 }
 0x12c   : > { %v1894_v62 = vpop.f32.mrb[14].mxu1  ;;  %v2575_v6 = vadd.f32 %v2027_v59, %v2520_v13 }
 0x12d   : > { %v1966_v63 = vpop.f32.mrb[14].mxu0  ;;  %v659_v0 = vpop.f32.mrb[15].mxu1  ;;  %v2570_v2 = vadd.f32 %v2028_v61, %v2520_v13 }
 0x12e   : > { %v2029_v3 = vadd.f32 %v1966_v63, %v1894_v62  ;;  %v1110_v4 = vpop.f32.mrb[15].mxu0 }
 0x12f   : > { %v2030_v5 = vadd.f32 %v1110_v4, %v659_v0  ;;  %1180 = vadd.xlane.f32.xlu1 %v2567_v1  ;;  %1182 = vadd.xlane.f32.xlu0 %v2570_v2 }
 0x130   : > { %v2583_v8 = vadd.f32 %v2029_v3, %v2520_v13 }
 0x131   : > { %v2578_v7 = vadd.f32 %v2030_v5, %v2520_v13 }
 0x133   : > { %1184 = vadd.xlane.f32.xlu1 %v2575_v6  ;;  %1186 = vadd.xlane.f32.xlu0 %v2578_v7 }
 0x137   : > { %1188 = vadd.xlane.f32.xlu1 %v2583_v8 }
 0x1a4   : > { %v1159_v9 = vpop.xlane.xlu0 %1158 }
 0x1a5   : > { %v1191_v10 = vmul.f32 0.0078125, %v1159_v9 }
 0x1a7   : > { %v2587_v11 = vsub.f32 %v2523_v18, %v1191_v10 }
 0x1a8   : > { %v1161_v12 = vpop.xlane.xlu0 %1160  ;;  %v1163_v14 = vpop.xlane.xlu1 %1162 }
 0x1a9   : > { %v1192_v15 = vmul.f32 0.0078125, %v1161_v12  ;;  %v1193_v16 = vmul.f32 0.0078125, %v1163_v14  ;;  %v1223_v17 = vmul.f32 %v2587_v11, %v2587_v11 }
 0x1ab   : > { %v2592_v19 = vsub.f32 %v2527_v25, %v1192_v15  ;;  %v2595_v13 = vsub.f32 %v2530_v26, %v1193_v16  ;;  %1239 = vadd.xlane.f32.xlu0 %v1223_v17 }
 0x1ac   : > { %v1165_v20 = vpop.xlane.xlu1 %1164  ;;  %v1167_v21 = vpop.xlane.xlu0 %1166 }
 0x1ad   : > { %v1194_v22 = vmul.f32 0.0078125, %v1165_v20  ;;  %v1195_v23 = vmul.f32 0.0078125, %v1167_v21  ;;  %v1224_v18 = vmul.f32 %v2592_v19, %v2592_v19  ;;  %v1225_v24 = vmul.f32 %v2595_v13, %v2595_v13 }
 0x1af   : > { %v2602_v27 = vsub.f32 %v2535_v33, %v1194_v22  ;;  %v2605_v25 = vsub.f32 %v2538_v34, %v1195_v23  ;;  %1241 = vadd.xlane.f32.xlu1 %v1224_v18  ;;  %1243 = vadd.xlane.f32.xlu0 %v1225_v24 }
 0x1b0   : > { %v1169_v26 = vpop.xlane.xlu1 %1168  ;;  %v1171_v28 = vpop.xlane.xlu0 %1170 }
 0x1b1   : > { %v1196_v29 = vmul.f32 0.0078125, %v1169_v26  ;;  %v1197_v30 = vmul.f32 0.0078125, %v1171_v28  ;;  %v1226_v31 = vmul.f32 %v2602_v27, %v2602_v27  ;;  %v1227_v32 = vmul.f32 %v2605_v25, %v2605_v25 }
 0x1b3   : > { %v2612_v35 = vsub.f32 %v2543_v41, %v1196_v29  ;;  %v2615_v33 = vsub.f32 %v2546_v42, %v1197_v30  ;;  %1245 = vadd.xlane.f32.xlu1 %v1226_v31  ;;  %1247 = vadd.xlane.f32.xlu0 %v1227_v32 }
 0x1b4   : > { %v1173_v34 = vpop.xlane.xlu1 %1172  ;;  %v1175_v36 = vpop.xlane.xlu0 %1174 }
 0x1b5   : > { %v1198_v37 = vmul.f32 0.0078125, %v1173_v34  ;;  %v1199_v38 = vmul.f32 0.0078125, %v1175_v36  ;;  %v1228_v39 = vmul.f32 %v2612_v35, %v2612_v35  ;;  %v1229_v40 = vmul.f32 %v2615_v33, %v2615_v33 }
 0x1b7   : > { %v2622_v43 = vsub.f32 %v2551_v49, %v1198_v37  ;;  %v2625_v41 = vsub.f32 %v2554_v50, %v1199_v38  ;;  %1249 = vadd.xlane.f32.xlu1 %v1228_v39  ;;  %1251 = vadd.xlane.f32.xlu0 %v1229_v40  ;;  %v2669_v37 = vld [vmem:[%s2790_s3] ss:$0 sm:$0xff] }
 0x1b8   : > { %v1177_v42 = vpop.xlane.xlu1 %1176  ;;  %v1179_v44 = vpop.xlane.xlu0 %1178  ;;  %v2675_v40 = vld [vmem:[%s2791_s4] ss:$0 sm:$0xff] }
 0x1b9   : > { %v1200_v45 = vmul.f32 0.0078125, %v1177_v42  ;;  %v1201_v46 = vmul.f32 0.0078125, %v1179_v44  ;;  %v1230_v47 = vmul.f32 %v2622_v43, %v2622_v43  ;;  %v1231_v48 = vmul.f32 %v2625_v41, %v2625_v41 }
 0x1bb   : > { %v2632_v51 = vsub.f32 %v2559_v57, %v1200_v45  ;;  %v2635_v49 = vsub.f32 %v2562_v58, %v1201_v46  ;;  %1253 = vadd.xlane.f32.xlu1 %v1230_v47  ;;  %1255 = vadd.xlane.f32.xlu0 %v1231_v48 }
 0x1bc   : > { %v1181_v50 = vpop.xlane.xlu1 %1180  ;;  %v1183_v52 = vpop.xlane.xlu0 %1182 }
 0x1bd   : > { %v1202_v53 = vmul.f32 0.0078125, %v1181_v50  ;;  %v1203_v54 = vmul.f32 0.0078125, %v1183_v52  ;;  %v1232_v55 = vmul.f32 %v2632_v51, %v2632_v51  ;;  %v1233_v56 = vmul.f32 %v2635_v49, %v2635_v49 }
 0x1bf   : > { %v2642_v59 = vsub.f32 %v2567_v1, %v1202_v53  ;;  %v2645_v57 = vsub.f32 %v2570_v2, %v1203_v54  ;;  %1257 = vadd.xlane.f32.xlu1 %v1232_v55  ;;  %1259 = vadd.xlane.f32.xlu0 %v1233_v56 }
 0x1c0   : > { %v1185_v58 = vpop.xlane.xlu1 %1184  ;;  %v1187_v60 = vpop.xlane.xlu0 %1186 }
 0x1c1   : > { %v1204_v61 = vmul.f32 0.0078125, %v1185_v58  ;;  %v1205_v62 = vmul.f32 0.0078125, %v1187_v60  ;;  %v1234_v63 = vmul.f32 %v2642_v59, %v2642_v59  ;;  %v1235_v0 = vmul.f32 %v2645_v57, %v2645_v57 }
 0x1c3   : > { %v2652_v3 = vsub.f32 %v2575_v6, %v1204_v61  ;;  %v2655_v1 = vsub.f32 %v2578_v7, %v1205_v62  ;;  %1261 = vadd.xlane.f32.xlu1 %v1234_v63  ;;  %1263 = vadd.xlane.f32.xlu0 %v1235_v0 }
 0x1c4   : > { %v1189_v2 = vpop.xlane.xlu1 %1188 }
 0x1c5   : > { %v1206_v4 = vmul.f32 0.0078125, %v1189_v2  ;;  %v1236_v5 = vmul.f32 %v2652_v3, %v2652_v3  ;;  %v1237_v9 = vmul.f32 %v2655_v1, %v2655_v1 }
 0x1c7   : > { %v2662_v10 = vsub.f32 %v2583_v8, %v1206_v4  ;;  %1265 = vadd.xlane.f32.xlu1 %v1236_v5  ;;  %1267 = vadd.xlane.f32.xlu0 %v1237_v9 }
 0x1c9   : > { %v1238_v6 = vmul.f32 %v2662_v10, %v2662_v10 }
 0x1cb   : > { %1269 = vadd.xlane.f32.xlu1 %v1238_v6 }
 0x238   : > { %v1240_v7 = vpop.xlane.xlu0 %1239 }
 0x239   : > { %v1271_v12 = vmul.f32 0.0078125, %v1240_v7 }
 0x23b   : > { %v1287_v14 = vadd.f32 1e-06, %v1271_v12 }
 0x23c   : > { %v1242_v15 = vpop.xlane.xlu1 %1241  ;;  %v1244_v16 = vpop.xlane.xlu0 %1243 }
 0x23d   : > { %2120 = vrsqrt.f32 %v1287_v14  ;;  %v1272_v17 = vmul.f32 0.0078125, %v1242_v15  ;;  %v1273_v20 = vmul.f32 0.0078125, %v1244_v16 }
 0x23f   : > { %v1288_v21 = vadd.f32 1e-06, %v1272_v17  ;;  %v1289_v22 = vadd.f32 1e-06, %v1273_v20 }
 0x240   : > { %v1246_v23 = vpop.xlane.xlu1 %1245  ;;  %v1248_v18 = vpop.xlane.xlu0 %1247 }
 0x241   : > { %2122 = vrsqrt.f32 %v1288_v21  ;;  %v1274_v8 = vmul.f32 0.0078125, %v1246_v23  ;;  %v1275_v24 = vmul.f32 0.0078125, %v1248_v18 }
 0x242   : > { %2124 = vrsqrt.f32 %v1289_v22 }
 0x243   : > { %v1290_v26 = vadd.f32 1e-06, %v1274_v8  ;;  %v1291_v28 = vadd.f32 1e-06, %v1275_v24 }
 0x244   : > { %v1250_v29 = vpop.xlane.xlu1 %1249  ;;  %v1252_v30 = vpop.xlane.xlu0 %1251 }
 0x245   : > { %2126 = vrsqrt.f32 %v1290_v26  ;;  %v1276_v31 = vmul.f32 0.0078125, %v1250_v29  ;;  %v1277_v36 = vmul.f32 0.0078125, %v1252_v30 }
 0x246   : > { %2128 = vrsqrt.f32 %v1291_v28 }
 0x247   : > { %v2121_v32 = vpop.eup %2120  ;;  %v1292_v34 = vadd.f32 1e-06, %v1276_v31  ;;  %v1293_v45 = vadd.f32 1e-06, %v1277_v36 }
 0x248   : > { %v1254_v38 = vpop.xlane.xlu1 %1253  ;;  %v1319_v39 = vmul.f32 %v2121_v32, %v2587_v11  ;;  %v1256_v48 = vpop.xlane.xlu0 %1255 }
 0x249   : > { %2130 = vrsqrt.f32 %v1292_v34  ;;  %v1278_v46 = vmul.f32 0.0078125, %v1254_v38  ;;  %v1279_v56 = vmul.f32 0.0078125, %v1256_v48 }
 0x24a   : > { %v1342_v42 = vmul.f32 %v2669_v37, %v1319_v39  ;;  %2132 = vrsqrt.f32 %v1293_v45 }
 0x24b   : > { %v2123_v44 = vpop.eup %2122  ;;  %v1294_v55 = vadd.f32 1e-06, %v1278_v46 }
 0x24c   : > { %v2125_v47 = vpop.eup %2124  ;;  %v1365_v50 = vadd.f32 %v2675_v40, %v1342_v42  ;;  %v1320_v52 = vmul.f32 %v2123_v44, %v2592_v19  ;;  %v1258_v58 = vpop.xlane.xlu1 %1257  ;;  %v1295_v19 = vadd.f32 1e-06, %v1279_v56 }
 0x24d   : > { %v1321_v53 = vmul.f32 %v2125_v47, %v2595_v13  ;;  %2134 = vrsqrt.f32 %v1294_v55  ;;  %v1280_v0 = vmul.f32 0.0078125, %v1258_v58  ;;  %v1260_v13 = vpop.xlane.xlu0 %1259 }
 0x24e   : > { %1381 = vxpose.xlu0.b32.start [1/16] %v1365_v50, 128  ;;  %v1343_v11 = vmul.f32 %v2669_v37, %v1320_v52  ;;  %2136 = vrsqrt.f32 %v1295_v19  ;;  %v1281_v7 = vmul.f32 0.0078125, %v1260_v13 }
 0x24f   : > { %v2127_v54 = vpop.eup %2126  ;;  %v1344_v61 = vmul.f32 %v2669_v37, %v1321_v53  ;;  %v1296_v6 = vadd.f32 1e-06, %v1280_v0 }
 0x250   : > { %v1366_v60 = vadd.f32 %v2675_v40, %v1343_v11  ;;  %v1322_v62 = vmul.f32 %v2127_v54, %v2602_v27  ;;  %v2129_v63 = vpop.eup %2128  ;;  %v1262_v12 = vpop.xlane.xlu1 %1261  ;;  %v1297_v17 = vadd.f32 1e-06, %v1281_v7 }
 0x251   : > { %v1367_v2 = vadd.f32 %v2675_v40, %v1344_v61  ;;  %v1323_v5 = vmul.f32 %v2129_v63, %v2605_v25  ;;  %2138 = vrsqrt.f32 %v1296_v6  ;;  %v1282_v20 = vmul.f32 0.0078125, %v1262_v12  ;;  %v1264_v21 = vpop.xlane.xlu0 %1263 }
 0x252   : > { %1382 = vxpose.xlu0.b32.cont [2/16] %v1366_v60, 128  ;;  %v1345_v4 = vmul.f32 %v2669_v37, %v1322_v62  ;;  %2140 = vrsqrt.f32 %v1297_v17  ;;  %v1283_v24 = vmul.f32 0.0078125, %v1264_v21 }
 0x253   : > { %v2131_v9 = vpop.eup %2130  ;;  %v1346_v14 = vmul.f32 %v2669_v37, %v1323_v5  ;;  %v1298_v8 = vadd.f32 1e-06, %v1282_v20 }
 0x254   : > { %v1368_v27 = vadd.f32 %v2675_v40, %v1345_v4  ;;  %v1324_v15 = vmul.f32 %v2131_v9, %v2612_v35  ;;  %v2133_v16 = vpop.eup %2132  ;;  %v1266_v26 = vpop.xlane.xlu1 %1265  ;;  %v1299_v31 = vadd.f32 1e-06, %v1283_v24 }
 0x255   : > { %v1369_v25 = vadd.f32 %v2675_v40, %v1346_v14  ;;  %v1325_v23 = vmul.f32 %v2133_v16, %v2615_v33  ;;  %2142 = vrsqrt.f32 %v1298_v8  ;;  %v1284_v32 = vmul.f32 0.0078125, %v1266_v26  ;;  %v1268_v34 = vpop.xlane.xlu0 %1267 }
 0x256   : > { %1383 = vxpose.xlu0.b32.cont [3/16] %v1367_v2, 128  ;;  %v1347_v22 = vmul.f32 %v2669_v37, %v1324_v15  ;;  %2144 = vrsqrt.f32 %v1299_v31  ;;  %v1285_v44 = vmul.f32 0.0078125, %v1268_v34 }
 0x257   : > { %v2135_v18 = vpop.eup %2134  ;;  %v1348_v28 = vmul.f32 %v2669_v37, %v1325_v23  ;;  %v1300_v42 = vadd.f32 1e-06, %v1284_v32 }
 0x258   : > { %v1370_v35 = vadd.f32 %v2675_v40, %v1347_v22  ;;  %v1326_v29 = vmul.f32 %v2135_v18, %v2622_v43  ;;  %v2137_v30 = vpop.eup %2136  ;;  %v1270_v45 = vpop.xlane.xlu1 %1269  ;;  %v1301_v50 = vadd.f32 1e-06, %v1285_v44 }
 0x259   : > { %v1371_v33 = vadd.f32 %v2675_v40, %v1348_v28  ;;  %v1327_v38 = vmul.f32 %v2137_v30, %v2625_v41  ;;  %2146 = vrsqrt.f32 %v1300_v42  ;;  %v1286_v52 = vmul.f32 0.0078125, %v1270_v45 }
 0x25a   : > { %1384 = vxpose.xlu0.b32.cont [4/16] %v1368_v27, 128  ;;  %v1349_v36 = vmul.f32 %v2669_v37, %v1326_v29  ;;  %2148 = vrsqrt.f32 %v1301_v50 }
 0x25b   : > { %v2139_v39 = vpop.eup %2138  ;;  %v1350_v46 = vmul.f32 %v2669_v37, %v1327_v38  ;;  %v1302_v55 = vadd.f32 1e-06, %v1286_v52 }
 0x25c   : > { %v1372_v43 = vadd.f32 %v2675_v40, %v1349_v36  ;;  %v1328_v47 = vmul.f32 %v2139_v39, %v2632_v51  ;;  %v2141_v48 = vpop.eup %2140 }
 0x25d   : > { %v1373_v53 = vadd.f32 %v2675_v40, %v1350_v46  ;;  %v1329_v11 = vmul.f32 %v2141_v48, %v2635_v49  ;;  %2150 = vrsqrt.f32 %v1302_v55 }
 0x25e   : > { %1385 = vxpose.xlu0.b32.cont [5/16] %v1369_v25, 128  ;;  %v1351_v41 = vmul.f32 %v2669_v37, %v1328_v47 }
 0x25f   : > { %v2143_v54 = vpop.eup %2142  ;;  %v1352_v58 = vmul.f32 %v2669_v37, %v1329_v11 }
 0x260   : > { %v1374_v56 = vadd.f32 %v2675_v40, %v1351_v41  ;;  %v1330_v51 = vmul.f32 %v2143_v54, %v2642_v59  ;;  %v2145_v60 = vpop.eup %2144 }
 0x261   : > { %v1375_v61 = vadd.f32 %v2675_v40, %v1352_v58  ;;  %v1331_v63 = vmul.f32 %v2145_v60, %v2645_v57 }
 0x262   : > { %1386 = vxpose.xlu0.b32.cont [6/16] %v1370_v35, 128  ;;  %v1353_v62 = vmul.f32 %v2669_v37, %v1330_v51 }
 0x263   : > { %v2147_v49 = vpop.eup %2146  ;;  %v1354_v0 = vmul.f32 %v2669_v37, %v1331_v63 }
 0x264   : > { %v1376_v19 = vadd.f32 %v2675_v40, %v1353_v62  ;;  %v1332_v13 = vmul.f32 %v2147_v49, %v2652_v3  ;;  %v2149_v2 = vpop.eup %2148 }
 0x265   : > { %v1377_v59 = vadd.f32 %v2675_v40, %v1354_v0  ;;  %v1333_v5 = vmul.f32 %v2149_v2, %v2655_v1 }
 0x266   : > { %1387 = vxpose.xlu0.b32.cont [7/16] %v1371_v33, 128  ;;  %v1355_v4 = vmul.f32 %v2669_v37, %v1332_v13 }
 0x267   : > { %v2151_v9 = vpop.eup %2150  ;;  %v1356_v6 = vmul.f32 %v2669_v37, %v1333_v5 }
 0x268   : > { %v1378_v57 = vadd.f32 %v2675_v40, %v1355_v4  ;;  %v1334_v7 = vmul.f32 %v2151_v9, %v2662_v10 }
 0x269   : > { %v1379_v3 = vadd.f32 %v2675_v40, %v1356_v6 }
 0x26a   : > { %1388 = vxpose.xlu0.b32.cont [8/16] %v1372_v43, 128  ;;  %v1357_v12 = vmul.f32 %v2669_v37, %v1334_v7 }
 0x26c   : > { %v1380_v27 = vadd.f32 %v2675_v40, %v1357_v12 }
 0x26e   : > { %1389 = vxpose.xlu0.b32.cont [9/16] %v1373_v53, 128 }
 0x272   : > { %1390 = vxpose.xlu0.b32.cont [10/16] %v1374_v56, 128 }
 0x276   : > { %1391 = vxpose.xlu0.b32.cont [11/16] %v1375_v61, 128 }
 0x27a   : > { %1392 = vxpose.xlu0.b32.cont [12/16] %v1376_v19, 128 }
 0x27e   : > { %1393 = vxpose.xlu0.b32.cont [13/16] %v1377_v59, 128 }
 0x282   : > { %1394 = vxpose.xlu0.b32.cont [14/16] %v1378_v57, 128 }
 0x286   : > { %1395 = vxpose.xlu0.b32.cont [15/16] %v1379_v3, 128 }
 0x28a   : > { %1396 = vxpose.xlu0.b32.end [16/16] %v1380_v27, 128 }
 0x2ce   : > { %v1397_v1 = vpop.trf.xlu0 }
 0x2cf   : > { %1413 = vst [vmem:[%s2725_s17] sm:$0xff] %v1397_v1 }
 0x2d2   : > { %v1398_v10 = vpop.trf.xlu0 }
 0x2d3   : > { %1414 = vst [vmem:[%s2725_s17 + $0x8] sm:$0xff] %v1398_v10 }
 0x2d6   : > { %v1399_v37 = vpop.trf.xlu0  ;;  %v1497_v26 = vld [vmem:[%s2725_s17] sm:$0xff] (%p2284_p5) }
 0x2d7   : > { %1415 = vst [vmem:[%s2725_s17 + $0x10] sm:$0xff] %v1399_v37  ;;  %1498 = vst [vmem:[%s1439_s6] sm:$0xff] (%p2284_p5), %v1497_v26 }
 0x2da   : > { %v1400_v40 = vpop.trf.xlu0  ;;  %v1499_v35 = vld [vmem:[%s2725_s17 + $0x8] sm:$0xff] (%p2284_p5) }
 0x2db   : > { %1416 = vst [vmem:[%s2725_s17 + $0x18] sm:$0xff] %v1400_v40  ;;  %1500 = vst [vmem:[%s1439_s6 + $0x10] sm:$0xff] (%p2284_p5), %v1499_v35 }
 0x2de   : > { %v1401_v14 = vpop.trf.xlu0  ;;  %v1501_v28 = vld [vmem:[%s2725_s17 + $0x10] sm:$0xff] (%p2284_p5) }
 0x2df   : > { %1417 = vst [vmem:[%s2725_s17 + $0x20] sm:$0xff] %v1401_v14  ;;  %1502 = vst [vmem:[%s1439_s6 + $0x20] sm:$0xff] (%p2284_p5), %v1501_v28 }
 0x2e2   : > { %v1402_v15 = vpop.trf.xlu0  ;;  %v1503_v29 = vld [vmem:[%s2725_s17 + $0x18] sm:$0xff] (%p2284_p5) }
 0x2e3   : > { %1418 = vst [vmem:[%s2725_s17 + $0x28] sm:$0xff] %v1402_v15  ;;  %1504 = vst [vmem:[%s1439_s6 + $0x30] sm:$0xff] (%p2284_p5), %v1503_v29 }
 0x2e6   : > { %v1403_v16 = vpop.trf.xlu0  ;;  %v1505_v30 = vld [vmem:[%s2725_s17 + $0x20] sm:$0xff] (%p2284_p5) }
 0x2e7   : > { %1419 = vst [vmem:[%s2725_s17 + $0x30] sm:$0xff] %v1403_v16  ;;  %1506 = vst [vmem:[%s1439_s6 + $0x40] sm:$0xff] (%p2284_p5), %v1505_v30 }
 0x2ea   : > { %v1404_v17 = vpop.trf.xlu0  ;;  %v1507_v31 = vld [vmem:[%s2725_s17 + $0x28] sm:$0xff] (%p2284_p5) }
 0x2eb   : > { %1420 = vst [vmem:[%s2725_s17 + $0x38] sm:$0xff] %v1404_v17  ;;  %1508 = vst [vmem:[%s1439_s6 + $0x50] sm:$0xff] (%p2284_p5), %v1507_v31 }
 0x2ee   : > { %v1405_v20 = vpop.trf.xlu0  ;;  %v1509_v32 = vld [vmem:[%s2725_s17 + $0x30] sm:$0xff] (%p2284_p5) }
 0x2ef   : > { %1421 = vst [vmem:[%s2725_s17 + $0x40] sm:$0xff] %v1405_v20  ;;  %1510 = vst [vmem:[%s1439_s6 + $0x60] sm:$0xff] (%p2284_p5), %v1509_v32 }
 0x2f2   : > { %v1406_v21 = vpop.trf.xlu0  ;;  %v1511_v34 = vld [vmem:[%s2725_s17 + $0x38] sm:$0xff] (%p2284_p5) }
 0x2f3   : > { %1422 = vst [vmem:[%s2725_s17 + $0x48] sm:$0xff] %v1406_v21  ;;  %1512 = vst [vmem:[%s1439_s6 + $0x70] sm:$0xff] (%p2284_p5), %v1511_v34 }
 0x2f6   : > { %v1407_v25 = vpop.trf.xlu0  ;;  %v1513_v33 = vld [vmem:[%s2725_s17 + $0x40] sm:$0xff] (%p2284_p5) }
 0x2f7   : > { %1423 = vst [vmem:[%s2725_s17 + $0x50] sm:$0xff] %v1407_v25  ;;  %1514 = vst [vmem:[%s1439_s6 + $0x80] sm:$0xff] (%p2284_p5), %v1513_v33 }
 0x2fa   : > { %v1408_v22 = vpop.trf.xlu0  ;;  %v1515_v36 = vld [vmem:[%s2725_s17 + $0x48] sm:$0xff] (%p2284_p5) }
 0x2fb   : > { %1424 = vst [vmem:[%s2725_s17 + $0x58] sm:$0xff] %v1408_v22  ;;  %1516 = vst [vmem:[%s1439_s6 + $0x90] sm:$0xff] (%p2284_p5), %v1515_v36 }
 0x2fe   : > { %v1409_v23 = vpop.trf.xlu0  ;;  %v1517_v38 = vld [vmem:[%s2725_s17 + $0x50] sm:$0xff] (%p2284_p5) }
 0x2ff   : > { %1425 = vst [vmem:[%s2725_s17 + $0x60] sm:$0xff] %v1409_v23  ;;  %1518 = vst [vmem:[%s1439_s6 + $0xa0] sm:$0xff] (%p2284_p5), %v1517_v38 }
 0x302   : > { %v1410_v18 = vpop.trf.xlu0  ;;  %v1519_v39 = vld [vmem:[%s2725_s17 + $0x58] sm:$0xff] (%p2284_p5) }
 0x303   : > { %1426 = vst [vmem:[%s2725_s17 + $0x68] sm:$0xff] %v1410_v18  ;;  %1520 = vst [vmem:[%s1439_s6 + $0xb0] sm:$0xff] (%p2284_p5), %v1519_v39 }
 0x305   : > { %1435 = sbr.rel (!%p2284_p5) target bundleno = 788 (0x314), region = 44 }
 0x306   : > { %v1411_v8 = vpop.trf.xlu0  ;;  %v1521_v42 = vld [vmem:[%s2725_s17 + $0x60] sm:$0xff] (%p2284_p5) }
 0x307   : > { %1427 = vst [vmem:[%s2725_s17 + $0x70] sm:$0xff] %v1411_v8  ;;  %1522 = vst [vmem:[%s1439_s6 + $0xc0] sm:$0xff] (%p2284_p5), %v1521_v42 }
 0x30a   : > { %v1412_v24 = vpop.trf.xlu0  ;;  %v1523_v44 = vld [vmem:[%s2725_s17 + $0x68] sm:$0xff] (%p2284_p5) }
 0x30b   : > { %1428 = vst [vmem:[%s2725_s17 + $0x78] sm:$0xff] %v1412_v24  ;;  %1524 = vst [vmem:[%s1439_s6 + $0xd0] sm:$0xff] (%p2284_p5), %v1523_v44 }
 0x30e   : > { %v1525_v45 = vld [vmem:[%s2725_s17 + $0x70] sm:$0xff] }
 0x30f   : > { %1526 = vst [vmem:[%s1439_s6 + $0xe0] sm:$0xff] %v1525_v45 }
 0x312   : > { %v1527_v43 = vld [vmem:[%s2725_s17 + $0x78] sm:$0xff] }
 0x313   : > { %1528 = vst [vmem:[%s1439_s6 + $0xf0] sm:$0xff] %v1527_v43 }
 0x314 PF: > { %s15_s24 = sadd.s32 1, %s2206_s24   ;;  %s2794_s18 = smov %s2186_s19 }
 0x315   : > { %p12_p10 = scmp.ge.s32.totalorder %s15_s24, 6   ;;  %s2795_s19 = smov %s2295_s8 }
 0x316   : > { %s2796_s20 = smov %s2198_s22  ;;  %s2797_s21 = smov %s2202_s23 }
 0x317   : > { %s2798_s22 = smov %s2801_s25  ;;  %s2799_s23 = smov %s2805_s26 }
 0x318   :  { %14 = sbr.rel (!%p12_p10) target bundleno = 4 (0x4), region = 113 }

</bundles_post_ra>
